<compile_context>
chip_gen: v7x
topology: tpu7x:2x2x1
jax: 0.10.0
libtpu: 0.0.40
codegen_flags: <defaults>
</compile_context>

<pallas_src>
import functools

import jax
import jax.numpy as jnp
import numpy as np
from jax.experimental import pallas as pl
from jax.experimental.pallas import tpu as pltpu


def _voxloss_kernel(x_ref, t_ref, nll_ref, cnt_ref, *, hw):
    """One (batch, pixel-tile) grid step.

    x_ref:   (1, C, TP)  logits  — classes on sublanes, pixels on lanes
    t_ref:   (1, 1, TP)  int32 targets
    nll_ref: (1, C, 1)   per-class sum of NLL for this batch (accumulated over tiles)
    cnt_ref: (1, C, 1)   per-class valid-pixel counts for this batch
    """
    ti = pl.program_id(1)

    @pl.when(ti == 0)
    def _():
        nll_ref[...] = jnp.zeros_like(nll_ref)
        cnt_ref[...] = jnp.zeros_like(cnt_ref)

    x = x_ref[...].astype(jnp.float32)          # (1, C, TP)  (bf16 inputs upcast here)
    t = t_ref[...]                              # (1, 1, TP)
    _, c, tp = x.shape

    # Numerically stable log-softmax along the class (sublane) axis.
    m = jnp.max(x, axis=1, keepdims=True)                                  # (1, 1, TP)
    lse = jnp.log(jnp.sum(jnp.exp(x - m), axis=1, keepdims=True)) + m      # (1, 1, TP)

    class_ids = jax.lax.broadcasted_iota(jnp.int32, (1, c, tp), 1)
    onehot = t == class_ids                                                # (1, C, TP)

    x_t = jnp.sum(jnp.where(onehot, x, 0.0), axis=1, keepdims=True)        # gather x[t]
    nll = lse - x_t                                                        # (1, 1, TP)

    # Mask lanes past the end of the pixel axis (ragged tail tile).  Use select
    # (jnp.where) so garbage/NaN padding never reaches the accumulators.
    pix = jax.lax.broadcasted_iota(jnp.int32, (1, 1, tp), 2) + ti * tp
    valid = pix < hw                                                       # (1, 1, TP)
    sel = jnp.logical_and(onehot, valid)                                   # (1, C, TP)

    # Per-class accumulation: S_c = sum_{i: t_i=c} nll_i and count_c (lane reduce).
    nll_ref[...] += jnp.sum(jnp.where(sel, nll, 0.0), axis=2, keepdims=True)
    cnt_ref[...] += jnp.sum(jnp.where(sel, 1.0, 0.0), axis=2, keepdims=True)


def vox_loss(logits_nchw, target, weight=None, with_weight=True, tile_p=1024):
    """JAX/Pallas equivalent of VoxLoss(F.cross_entropy, weight, with_weight).

    logits_nchw: (N, C, H, W), f32 or bf16 (bf16 is read at half HBM cost).
    target:      (N, H, W) integer class ids in [0, C).
    """
    n, c, h, w = logits_nchw.shape
    assert target.shape == (n, h, w)
    hw = h * w
    total = n * hw

    # Native layout: contiguous reshapes only (no HBM transpose pass).
    x = logits_nchw.reshape(n, c, hw)                  # (N, C, HW)
    t = target.reshape(n, 1, hw).astype(jnp.int32)     # (N, 1, HW)

    # Pixel tile: multiple of 128 (lane axis), capped so double-buffered inputs
    # stay far below the scoped-VMEM default (16 MiB v5e / 32 MiB v6e,v7x).
    tile_p = max(128, (int(tile_p) // 128) * 128)
    itemsize = jnp.dtype(x.dtype).itemsize
    while tile_p > 128 and tile_p * c * itemsize > (4 << 20):
        tile_p //= 2
    tile_p_eff = hw if hw <= tile_p else tile_p
    num_tiles = pl.cdiv(hw, tile_p_eff)

    tile_bytes = tile_p_eff * (c * itemsize + 4)
    vmem_limit = int(min(max(6 * tile_bytes + (4 << 20), 16 << 20), 48 << 20))

    kernel = functools.partial(_voxloss_kernel, hw=hw)

    # NOTE: if DMA is still exposed at large C, add pipeline_mode=pl.Buffered(3)
    # to the logits BlockSpec.
    nll_part, cnt_part = pl.pallas_call(
        kernel,
        out_shape=(
            jax.ShapeDtypeStruct((n, c, 1), jnp.float32),
            jax.ShapeDtypeStruct((n, c, 1), jnp.float32),
        ),
        grid_spec=pltpu.PrefetchScalarGridSpec(
            num_scalar_prefetch=0,
            grid=(n, num_tiles),
            in_specs=[
                pl.BlockSpec((1, c, tile_p_eff), lambda b, i: (b, 0, i)),   # logits
                pl.BlockSpec((1, 1, tile_p_eff), lambda b, i: (b, 0, i)),   # targets
            ],
            out_specs=(
                pl.BlockSpec((1, c, 1), lambda b, i: (b, 0, 0)),   # per-batch nll sums
                pl.BlockSpec((1, c, 1), lambda b, i: (b, 0, 0)),   # per-batch counts
            ),
        ),
        compiler_params=pltpu.CompilerParams(
            dimension_semantics=("parallel", "arbitrary"),   # batch axis -> 2 TCs on v7x
            vmem_limit_bytes=vmem_limit),
    )(x, t)

    # Tiny (N, C) combine in the wrapper: class weights + weighted mean reduction.
    nll_c = jnp.sum(nll_part[:, :, 0], axis=0)   # (C,)
    cnt_c = jnp.sum(cnt_part[:, :, 0], axis=0)   # (C,)

    if with_weight:
        if weight is not None:
            wc = jnp.asarray(weight, jnp.float32).reshape(c)
        else:
            wc = 1.0 - cnt_c / jnp.float32(total) + 0.001
    else:
        wc = jnp.ones((c,), jnp.float32)

    return jnp.sum(wc * nll_c) / jnp.sum(wc * cnt_c)


def _reference_vox_loss(logits_nchw, target, weight=None, with_weight=True):
    """Pure-JAX reference matching PyTorch VoxLoss + F.cross_entropy."""
    n, c, h, w = logits_nchw.shape
    x = jnp.transpose(logits_nchw, (0, 2, 3, 1)).reshape(-1, c).astype(jnp.float32)
    t = target.reshape(-1).astype(jnp.int32)
    if with_weight:
        if weight is not None:
            wc = jnp.asarray(weight, jnp.float32)
        else:
            cnt = jnp.sum(t[:, None] == jnp.arange(c)[None, :], axis=0).astype(jnp.float32)
            wc = 1.0 - cnt / t.shape[0] + 0.001
    else:
        wc = jnp.ones((c,), jnp.float32)
    logp = jax.nn.log_softmax(x, axis=-1)
    nll = -jnp.take_along_axis(logp, t[:, None], axis=1)[:, 0]
    wi = wc[t]
    return jnp.sum(wi * nll) / jnp.sum(wi)


if __name__ == "__main__":
    key = jax.random.PRNGKey(0)
    k1, k2, k3, k4 = jax.random.split(key, 4)

    # Case 1: computed class weights (weight=None), pixel axis divisible by 128.
    N, C, H, W = 2, 4, 16, 16
    logits = jax.random.normal(k1, (N, C, H, W), dtype=jnp.float32)
    target = jax.random.randint(k2, (N, H, W), 0, C, dtype=jnp.int32)
    loss = jax.block_until_ready(vox_loss(logits, target, weight=None, with_weight=True))
    ref = jax.block_until_ready(_reference_vox_loss(logits, target, None, True))
    np.testing.assert_allclose(np.asarray(loss), np.asarray(ref), rtol=1e-5, atol=1e-5)

    # Case 2: explicit weights + ragged pixel axis (exercises the masked tail tile).
    H2, W2 = 16, 17   # HW = 272, tile_p = 128 -> 3 tiles, last one masked
    logits2 = jax.random.normal(k3, (N, C, H2, W2), dtype=jnp.float32)
    target2 = jax.random.randint(k4, (N, H2, W2), 0, C, dtype=jnp.int32)
    wts = [0.5, 1.0, 2.0, 0.25]
    loss2 = jax.block_until_ready(vox_loss(logits2, target2, weight=wts, tile_p=128))
    ref2 = jax.block_until_ready(_reference_vox_loss(logits2, target2, wts, True))
    np.testing.assert_allclose(np.asarray(loss2), np.asarray(ref2), rtol=1e-5, atol=1e-5)

    # Case 3: with_weight=False (plain mean cross-entropy).
    loss3 = jax.block_until_ready(vox_loss(logits, target, with_weight=False))
    ref3 = jax.block_until_ready(_reference_vox_loss(logits, target, None, False))
    np.testing.assert_allclose(np.asarray(loss3), np.asarray(ref3), rtol=1e-5, atol=1e-5)

    print("KERNEL_OK")
</pallas_src>

<mosaic_0001>
module attributes {stable_mosaic.version = 11 : i64} {
  func.func @_voxloss_kernel(%arg0: i32, %arg1: i32, %arg2: memref<1x4x256xf32, #tpu.memory_space<vmem>>, %arg3: memref<1x1x256xi32, #tpu.memory_space<vmem>>, %arg4: memref<1x4x1xf32, #tpu.memory_space<vmem>>, %arg5: memref<1x4x1xf32, #tpu.memory_space<vmem>>) attributes {dimension_semantics = [#tpu.dimension_semantics<parallel>, #tpu.dimension_semantics<arbitrary>], iteration_bounds = array<i64: 2, 1>, scalar_prefetch = 0 : i64, scratch_operands = 0 : i64, tpu.core_type = #tpu.core_type<tc>, window_params = [{transform_indices = @transform_0, window_bounds = array<i64: 1, 4, 256>}, {transform_indices = @transform_1, window_bounds = array<i64: 1, 1, 256>}, {transform_indices = @transform_2, window_bounds = array<i64: 1, 4, 1>}, {transform_indices = @transform_3, window_bounds = array<i64: 1, 4, 1>}]} {
    %c0_i32 = arith.constant 0 : i32
    %0 = arith.cmpi eq, %arg1, %c0_i32 : i32
    %1 = arith.extui %0 : i1 to i32
    %c0_i32_0 = arith.constant 0 : i32
    %2 = arith.cmpi ne, %1, %c0_i32_0 : i32
    scf.if %2 {
      %cst_27 = arith.constant 0.000000e+00 : f32
      %47 = vector.broadcast %cst_27 : f32 to vector<1x4x1xf32>
      %c0_28 = arith.constant 0 : index
      %c0_29 = arith.constant 0 : index
      %c0_30 = arith.constant 0 : index
      %48 = vector.load %arg4[%c0_28, %c0_29, %c0_30] : memref<1x4x1xf32, #tpu.memory_space<vmem>>, vector<1x4x1xf32>
      tpu.vector_store %arg4[%c0_28, %c0_29, %c0_30], %47 {strides = array<i32>} : memref<1x4x1xf32, #tpu.memory_space<vmem>>, vector<1x4x1xf32>,
      %cst_31 = arith.constant 0.000000e+00 : f32
      %49 = vector.broadcast %cst_31 : f32 to vector<1x4x1xf32>
      %c0_32 = arith.constant 0 : index
      %c0_33 = arith.constant 0 : index
      %c0_34 = arith.constant 0 : index
      %50 = vector.load %arg5[%c0_32, %c0_33, %c0_34] : memref<1x4x1xf32, #tpu.memory_space<vmem>>, vector<1x4x1xf32>
      tpu.vector_store %arg5[%c0_32, %c0_33, %c0_34], %49 {strides = array<i32>} : memref<1x4x1xf32, #tpu.memory_space<vmem>>, vector<1x4x1xf32>,
    } else {
    }
    %c0 = arith.constant 0 : index
    %c0_1 = arith.constant 0 : index
    %c0_2 = arith.constant 0 : index
    %3 = vector.load %arg2[%c0, %c0_1, %c0_2] : memref<1x4x256xf32, #tpu.memory_space<vmem>>, vector<1x4x256xf32>
    %c0_3 = arith.constant 0 : index
    %c0_4 = arith.constant 0 : index
    %c0_5 = arith.constant 0 : index
    %4 = vector.load %arg3[%c0_3, %c0_4, %c0_5] : memref<1x1x256xi32, #tpu.memory_space<vmem>>, vector<1x1x256xi32>
    %cst = arith.constant dense<0xFF800000> : vector<1x256xf32>
    %5 = vector.multi_reduction <maximumf>, %3, %cst [1] : vector<1x4x256xf32> to vector<1x256xf32>
    %6 = vector.shape_cast %5 : vector<1x256xf32> to vector<1x1x256xf32>
    %7 = vector.broadcast %6 : vector<1x1x256xf32> to vector<1x4x256xf32>
    %8 = arith.subf %3, %7 : vector<1x4x256xf32>
    %9 = math.exp %8 : vector<1x4x256xf32>
    %cst_6 = arith.constant dense<0.000000e+00> : vector<1x256xf32>
    %10 = vector.multi_reduction <add>, %9, %cst_6 [1] : vector<1x4x256xf32> to vector<1x256xf32>
    %11 = vector.shape_cast %10 : vector<1x256xf32> to vector<1x1x256xf32>
    %12 = math.log %11 : vector<1x1x256xf32>
    %13 = arith.addf %12, %6 : vector<1x1x256xf32>
    %14 = tpu.iota {dimensions = array<i32: 1>} : vector<1x4x256xi32>
    %15 = vector.broadcast %4 : vector<1x1x256xi32> to vector<1x4x256xi32>
    %16 = arith.cmpi eq, %15, %14 : vector<1x4x256xi32>
    %cst_7 = arith.constant 0.000000e+00 : f32
    %17 = vector.broadcast %cst_7 : f32 to vector<1x4x256xf32>
    %18 = arith.select %16, %3, %17 : vector<1x4x256xi1>, vector<1x4x256xf32>
    %cst_8 = arith.constant dense<0.000000e+00> : vector<1x256xf32>
    %19 = vector.multi_reduction <add>, %18, %cst_8 [1] : vector<1x4x256xf32> to vector<1x256xf32>
    %20 = vector.shape_cast %19 : vector<1x256xf32> to vector<1x1x256xf32>
    %21 = arith.subf %13, %20 : vector<1x1x256xf32>
    %22 = tpu.iota {dimensions = array<i32: 2>} : vector<1x1x256xi32>
    %c256_i32 = arith.constant 256 : i32
    %23 = arith.muli %arg1, %c256_i32 : i32
    %24 = vector.broadcast %23 : i32 to vector<1x1x256xi32>
    %25 = arith.addi %22, %24 : vector<1x1x256xi32>
    %c256_i32_9 = arith.constant 256 : i32
    %26 = vector.broadcast %c256_i32_9 : i32 to vector<1x1x256xi32>
    %27 = arith.cmpi slt, %25, %26 : vector<1x1x256xi32>
    %28 = vector.broadcast %27 : vector<1x1x256xi1> to vector<1x4x256xi1>
    %29 = arith.andi %16, %28 : vector<1x4x256xi1>
    %c0_10 = arith.constant 0 : index
    %c0_11 = arith.constant 0 : index
    %c0_12 = arith.constant 0 : index
    %30 = vector.load %arg4[%c0_10, %c0_11, %c0_12] : memref<1x4x1xf32, #tpu.memory_space<vmem>>, vector<1x4x1xf32>
    %cst_13 = arith.constant 0.000000e+00 : f32
    %31 = vector.shape_cast %21 : vector<1x1x256xf32> to vector<1x1x256xf32>
    %32 = vector.broadcast %31 : vector<1x1x256xf32> to vector<1x4x256xf32>
    %33 = vector.broadcast %cst_13 : f32 to vector<1x4x256xf32>
    %34 = arith.select %29, %32, %33 : vector<1x4x256xi1>, vector<1x4x256xf32>
    %cst_14 = arith.constant dense<0.000000e+00> : vector<1x4xf32>
    %35 = vector.multi_reduction <add>, %34, %cst_14 [2] : vector<1x4x256xf32> to vector<1x4xf32>
    %36 = vector.shape_cast %35 : vector<1x4xf32> to vector<1x4x1xf32>
    %37 = arith.addf %30, %36 : vector<1x4x1xf32>
    %c0_15 = arith.constant 0 : index
    %c0_16 = arith.constant 0 : index
    %c0_17 = arith.constant 0 : index
    %38 = vector.load %arg4[%c0_15, %c0_16, %c0_17] : memref<1x4x1xf32, #tpu.memory_space<vmem>>, vector<1x4x1xf32>
    tpu.vector_store %arg4[%c0_15, %c0_16, %c0_17], %37 {strides = array<i32>} : memref<1x4x1xf32, #tpu.memory_space<vmem>>, vector<1x4x1xf32>,
    %c0_18 = arith.constant 0 : index
    %c0_19 = arith.constant 0 : index
    %c0_20 = arith.constant 0 : index
    %39 = vector.load %arg5[%c0_18, %c0_19, %c0_20] : memref<1x4x1xf32, #tpu.memory_space<vmem>>, vector<1x4x1xf32>
    %cst_21 = arith.constant 1.000000e+00 : f32
    %cst_22 = arith.constant 0.000000e+00 : f32
    %40 = vector.broadcast %cst_21 : f32 to vector<1x4x256xf32>
    %41 = vector.broadcast %cst_22 : f32 to vector<1x4x256xf32>
    %42 = arith.select %29, %40, %41 : vector<1x4x256xi1>, vector<1x4x256xf32>
    %cst_23 = arith.constant dense<0.000000e+00> : vector<1x4xf32>
    %43 = vector.multi_reduction <add>, %42, %cst_23 [2] : vector<1x4x256xf32> to vector<1x4xf32>
    %44 = vector.shape_cast %43 : vector<1x4xf32> to vector<1x4x1xf32>
    %45 = arith.addf %39, %44 : vector<1x4x1xf32>
    %c0_24 = arith.constant 0 : index
    %c0_25 = arith.constant 0 : index
    %c0_26 = arith.constant 0 : index
    %46 = vector.load %arg5[%c0_24, %c0_25, %c0_26] : memref<1x4x1xf32, #tpu.memory_space<vmem>>, vector<1x4x1xf32>
    tpu.vector_store %arg5[%c0_24, %c0_25, %c0_26], %45 {strides = array<i32>} : memref<1x4x1xf32, #tpu.memory_space<vmem>>, vector<1x4x1xf32>,
    return
  }
  func.func @transform_0(%arg0: i32, %arg1: i32) -> (i32, i32, i32) {
    %c0_i32 = arith.constant 0 : i32
    %c0_i32_0 = arith.constant 0 : i32
    return %arg0, %c0_i32, %arg1 : i32, i32, i32
  }
  func.func @transform_1(%arg0: i32, %arg1: i32) -> (i32, i32, i32) {
    %c0_i32 = arith.constant 0 : i32
    %c0_i32_0 = arith.constant 0 : i32
    return %arg0, %c0_i32, %arg1 : i32, i32, i32
  }
  func.func @transform_2(%arg0: i32, %arg1: i32) -> (i32, i32, i32) {
    %c0_i32 = arith.constant 0 : i32
    %c0_i32_0 = arith.constant 0 : i32
    %c0_i32_1 = arith.constant 0 : i32
    return %arg0, %c0_i32, %c0_i32_0 : i32, i32, i32
  }
  func.func @transform_3(%arg0: i32, %arg1: i32) -> (i32, i32, i32) {
    %c0_i32 = arith.constant 0 : i32
    %c0_i32_0 = arith.constant 0 : i32
    %c0_i32_1 = arith.constant 0 : i32
    return %arg0, %c0_i32, %c0_i32_0 : i32, i32, i32
  }
}

</mosaic_0001>

<bundles_post_ra>
// kernel: tpu_custom_call.1
= control target key start
LH: loop header
LB: loop body
LE: loop exit
PB: predicated region body
PF: predicated region fallthrough
CT: control target
= control target key end

     0   :  { %9 = vsyncpa [#allocation3], 0  ;;  %s948_s0 = inlined_call_operand.hbm [shape: f32[2,4,256], index: 0, kind: input, shape index: {}]   ;;  %s949_s1 = inlined_call_operand.hbm [shape: s32[2,1,256], index: 1, kind: input, shape index: {}]   ;;  %s950_s2 = inlined_call_operand.vmem [shape: f32[2,4,1], index: 2, kind: output, shape index: {0}]   ;;  %s951_s3 = inlined_call_operand.vmem [shape: f32[2,4,1], index: 3, kind: output, shape index: {1}]  }
   0x1   :  { %11 = vsyncpa [#allocation3 + $0x1], 0 }
   0x2   :  { %12 = vsyncpa [#allocation5], 0 }
   0x3   :  { %14 = vsyncpa [#allocation5 + $0x1], 0  ;;  %s740_s12 = smov 0   ;;  %s742_s13 = smov 0  }
   0x4   :  { %s744_s14 = smov 0   ;;  %s746_s15 = smov 0  }
   0x5   :  { %s748_s16 = smov 0   ;;  %s750_s17 = smov 0  }
   0x6 LB: > { %s514_s18 = sadd.s32 4294967295, %s715_s17   ;;  %s32_s19 = sadd.s32 1, %s711_s16  ;;  %s715_s17 = sphi %s750_s17, %s20_s17   ;;  %s711_s16 = sphi %s748_s16, %s965_s16   ;;  %s707_s15 = sphi %s746_s15, %s964_s15   ;;  %s703_s14 = sphi %s744_s14, %s963_s14   ;;  %s699_s13 = sphi %s742_s13, %s962_s13   ;;  %s695_s12 = sphi %s740_s12, %s961_s12  }
   0x7   : > { %p34_p0 = scmp.ge.s32.totalorder %s32_s19, 2  ;;  %s41_s20 = sadd.s32 1, %s703_s14 }
   0x8   : > { %p48_p1 = scmp.ne.s32.totalorder %s703_s14, %s699_s13  ;;  %p49_p2 = scmp.eq.s32.totalorder %s715_s17, 0 }
   0x9   : > { %s967_s19 = smov (%p34_p0, %s32_s19), 0  ;;  %p54_p4 = scmp.ne.s32.totalorder %s699_s13, %s695_s12 }
   0xa   : > { %p776_p3 = por %p49_p2, %p48_p1  ;;  %s36_s22 = ssub.s32 %s711_s16, %s967_s19 }
   0xb   : > { %p55_p5 = scmp.eq.s32.totalorder %s514_s18, 0  ;;  %p39_p6 = scmp.eq.s32.totalorder %s36_s22, 0 }
   0xc   : > { %p544_p8 = scmp.lt.s32.totalorder %s715_s17, 2  ;;  %s792_s25 = sand.u32 1, %s703_s14  }
   0xd   : > { %p783_p7 = por %p55_p5, %p54_p4  ;;  %s531_s26 = sshll.u32 %s711_s16, 7 }
   0xe   : > { %s789_s24 = scalar_select %p39_p6, %s703_s14, %s41_s20  }
   0xf   : > { %s954_s23 = scalar_select %p783_p7, 1, 0 }
  0x10   : > { %s518_s27 = sshll.u32 %s792_s25, 3  ;;  %s799_s30 = scalar_lea.hbm %s948_s0, %s531_s26 }
  0x11   : > { %s162_s4 = scalar_lea.vmem [#allocation2], %s518_s27  ;;  %p803_p9 = pnand %p544_p8, %p776_p3 }
  0x12   : > { %s172_s5 = sshll.u32 %s162_s4, 4  ;;  %s159_s7 = scalar_lea.sflag [#allocation3], %s792_s25  ;;  %s807_s5 = int_to_ptr.vmem [resolvable:$true] %s172_s5 }
  0x13   : > { %s601_s8 = scalar_lea.hbm %s799_s30, 128  ;;  %p603_p13 = pneg %p803_p9 }
  0x14   : > { %p602_p12 = scmp.ne.s32.totalorder %s799_s30, %s601_s8  ;;  %s606_s11 = scalar_lea.hbm %s948_s0, 256 }
  0x15   : > { %p607_p2 = scmp.lt.u32.totalorder %s799_s30, %s948_s0  ;;  %p608_p3 = scmp.lt.u32.totalorder %s606_s11, %s601_s8 }
  0x16   : > { %p604_p0 = pnand %p603_p13, %p602_p12  ;;  %p610_p5 = scmp.lt.u32.totalorder %s601_s8, %s799_s30 }
  0x17   : > { %p609_p4 = por %p608_p3, %p607_p2 }
  0x18   : > { %p605_p1 = pneg %p604_p0 }
  0x19   : > { %p611_p6 = por %p610_p5, %p609_p4 }
  0x1b   : > { %p612_p8 = pnand %p611_p6, %p605_p1 }
  0x1d   : > { %615 = shalt.err (!%p612_p8)
}
  0x1e   : > { %s616_s20 = scalar_lea.vmem %s807_s5, 128  ;;  %s717_s21 = smov [#allocation2]  }
  0x1f   : > { %p617_p12 = scmp.ne.s32.totalorder %s807_s5, %s616_s20  ;;  %s621_s22 = sshll.u32 %s717_s21, 4  ;;  %s622_s22 = int_to_ptr.vmem [resolvable:$false] %s621_s22 }
  0x20   : > { %s623_s26 = scalar_lea.vmem %s622_s22, 256  ;;  %p624_p11 = scmp.lt.s32.totalorder %s807_s5, %s622_s22 }
  0x21   : > { %p619_p0 = pnand %p617_p12, %p603_p13  ;;  %p625_p2 = scmp.lt.s32.totalorder %s623_s26, %s616_s20 }
  0x23   : > { %p620_p10 = pneg %p619_p0  ;;  %p626_p3 = por %p625_p2, %p624_p11 }
  0x25   : > { %p627_p4 = pnand %p626_p3, %p620_p10 }
  0x27   : > { %630 = shalt.err (!%p627_p4)
}
  0x28   : > { %540 = dma.hbm_to_vmem [thread:$0]  (!%p803_p9), %s799_s30, 128, %s807_s5, %s159_s7  }
  0x29   : > { %p956_p1 = scmp.lt.s32.totalorder %s715_s17, 3  ;;  %p957_p5 = scmp.ge.s32.totalorder %s715_s17, 1 }
  0x2a   : > { %s521_s28 = sshll.u32 %s792_s25, 1  ;;  %s532_s29 = sshll.u32 %s711_s16, 5 }
  0x2b   : > { %p841_p6 = pnand %p957_p5, %p956_p1  ;;  %s850_s9 = scalar_lea.hbm %s949_s1, %s532_s29 }
  0x2c   : > { %s183_s10 = scalar_lea.vmem [#allocation4], %s521_s28  ;;  %s180_s30 = scalar_lea.sflag [#allocation5], %s792_s25 }
  0x2d   : > { %s958_s27 = scalar_select %p841_p6, 1, 0 }
  0x2e   : > { %s193_s11 = sshll.u32 %s183_s10, 4  ;;  %s631_s5 = scalar_lea.hbm %s850_s9, 32  ;;  %s194_s11 = int_to_ptr.vmem [resolvable:$true] %s193_s11 }
  0x2f   : > { %p632_p10 = scmp.ne.s32.totalorder %s850_s9, %s631_s5  ;;  %s636_s18 = scalar_lea.hbm %s949_s1, 64 }
  0x30   : > { %p637_p12 = scmp.lt.u32.totalorder %s850_s9, %s949_s1  ;;  %p638_p0 = scmp.lt.u32.totalorder %s636_s18, %s631_s5 }
  0x31   : > { %p634_p11 = pnand %p632_p10, %p603_p13  ;;  %p640_p3 = scmp.lt.u32.totalorder %s631_s5, %s850_s9 }
  0x32   : > { %p639_p2 = por %p638_p0, %p637_p12 }
  0x33   : > { %p635_p8 = pneg %p634_p11 }
  0x34   : > { %p641_p4 = por %p640_p3, %p639_p2 }
  0x36   : > { %p642_p1 = pnand %p641_p4, %p635_p8 }
  0x38   : > { %645 = shalt.err (!%p642_p1)
}
  0x39   : > { %s646_s25 = scalar_lea.vmem %s194_s11, 32  ;;  %s718_s22 = smov [#allocation4]  }
  0x3a   : > { %p647_p5 = scmp.ne.s32.totalorder %s194_s11, %s646_s25  ;;  %s651_s26 = sshll.u32 %s718_s22, 4  ;;  %s652_s26 = int_to_ptr.vmem [resolvable:$false] %s651_s26 }
  0x3b   : > { %s653_s28 = scalar_lea.vmem %s652_s26, 64  ;;  %p654_p7 = scmp.lt.s32.totalorder %s194_s11, %s652_s26 }
  0x3c   : > { %p649_p10 = pnand %p647_p5, %p603_p13  ;;  %p655_p6 = scmp.lt.s32.totalorder %s653_s28, %s646_s25 }
  0x3e   : > { %p650_p11 = pneg %p649_p10  ;;  %p656_p0 = por %p655_p6, %p654_p7 }
  0x40   : > { %p657_p12 = pnand %p656_p0, %p650_p11 }
  0x42   : > { %660 = shalt.err (!%p657_p12)
}
  0x43   : > { %543 = dma.hbm_to_vmem [thread:$0]  (!%p803_p9), %s850_s9, 32, %s194_s11, %s180_s30  }
  0x44   : > { %p959_p8 = scmp.ne.s32.totalorder %s958_s27, 0 }
  0x45   : > { %s204_s29 = sand.u32 (!%p959_p8), 1, %s699_s13   ;;  %p960_p13 = scmp.ne.s32.totalorder (!%p959_p8), %s954_s23, 0 }
  0x46   : > { %202 = sbr.rel (%p959_p8) target bundleno = 299 (0x12b), region = 28  ;;  %s525_s4 = sshll.u32 (!%p959_p8), %s204_s29, 3 }
  0x47   : > { %s205_s8 = scalar_lea.sflag (!%p959_p8), [#allocation3], %s204_s29  ;;  %s208_s10 = scalar_lea.vmem (!%p959_p8), [#allocation2], %s525_s4 }
  0x4d   : > { %686 = dma.done.wait (%p960_p13), %s205_s8, 128  }
  0x4e   : > { %688 = vsyncadd (%p960_p13), %s205_s8, 4294967168  ;;  %s526_s5 = sshll.u32 %s204_s29, 1  ;;  %s214_s7 = scalar_lea.sflag [#allocation5], %s204_s29 }
  0x4f   : > { %s879_s6 = scalar_lea.vmem [#allocation4], %s526_s5 }
  0x50   : > { %690 = dma.done.wait (%p960_p13), %s214_s7, 32  }
  0x51   : > { %692 = vsyncadd (%p960_p13), %s214_s7, 4294967264  ;;  %p250_p7 = scmp.lt.s32.totalorder %s707_s15, 1  ;;  %vm262_vm0 = vcmask 3072   ;;  %vm270_vm1 = vcmask 1043456   ;;  %v719_v0 = vmov 0.0   ;;  %v265_v1 = vld [vmem:[%s208_s10] sm:$0xff]  ;;  %v315_v16 = vlaneseq }
  0x52   : > { %v268_v2 = vcombine.high %v265_v1, %v265_v1  ;;  %v271_v3 = vsel %vm270_vm1, %v265_v1, -inf  ;;  %v266_v23 = vld [vmem:[%s879_s6] sm:$0x3] }
  0x53   : > { %s969_s15 = smov (!%p250_p7, %s707_s15), 1  ;;  %v272_v4 = vrot.slane %v271_v3, 4  ;;  %v316_v19 = vshrl.u32 %v315_v16, 7 }
  0x54   : > { %s527_s27 = sshll.u32 %s969_s15, 2  ;;  %v278_v5 = vsel %vm270_vm1, %v268_v2, -inf }
  0x55   : > { %s895_s30 = scalar_lea.vmem %s950_s2, %s527_s27  ;;  %v273_v6 = vmax.f32 %v271_v3, %v272_v4  ;;  %v279_v7 = vrot.slane %v278_v5, 4  ;;  %v319_v22 = vsub.s32 0, %v316_v19  ;;  %v323_v24 = vsub.s32 1, %v316_v19  ;;  %s257_s18 = scalar_lea.vmem %s951_s3, %s527_s27 }
  0x56   : > { %263 = vst.msk [vmem:[%s895_s30] sm:$0xf] %vm262_vm0, %v719_v0  ;;  %264 = vst.msk [vmem:[%s257_s18] sm:$0xf] %vm262_vm0, %v719_v0 }
  0x57   : > { %v274_v8 = vrot.slane %v273_v6, 2  ;;  %v280_v9 = vmax.f32 %v278_v5, %v279_v7  ;;  %v320_v25 = vrot.slane %v266_v23, %v319_v22  ;;  %v324_v26 = vrot.slane %v266_v23, %v323_v24 }
  0x59   : > { %v275_v10 = vmax.f32 %v273_v6, %v274_v8  ;;  %v281_v11 = vrot.slane %v280_v9, 2  ;;  %vm325_vm2 = vcmp.eq.s32.totalorder %v320_v25, %v316_v19  ;;  %vm326_vm3 = vcmp.eq.s32.totalorder %v324_v26, %v316_v19 }
  0x5a   : > { %v327_v27 = vsel %vm325_vm2, %v265_v1, 0.0  ;;  %v328_v31 = vsel %vm326_vm3, %v268_v2, 0.0  ;;  %v372_v5 = vsel %vm325_vm2, 1.0, %v719_v0  ;;  %v373_v6 = vsel %vm326_vm3, 1.0, %v719_v0 }
  0x5b   : > { %v276_v12 = vrot.slane %v275_v10, 1  ;;  %v282_v13 = vmax.f32 %v280_v9, %v281_v11  ;;  %v329_v33 = vsel %vm270_vm1, %v327_v27, 0.0  ;;  %v336_v37 = vsel %vm270_vm1, %v328_v31, 0.0 }
  0x5c   : > { %v330_v38 = vrot.slane %v329_v33, 4  ;;  %v337_v41 = vrot.slane %v336_v37, 4  ;;  %v375_v11 = vsel %vm270_vm1, %v373_v6, 0.0 }
  0x5d   : > { %v277_v14 = vmax.f32 %v275_v10, %v276_v12  ;;  %v283_v15 = vrot.slane %v282_v13, 1  ;;  %v374_v10 = vsel %vm270_vm1, %v372_v5, 0.0 }
  0x5e   : > { %v331_v44 = vadd.f32 %v330_v38, %v329_v33  ;;  %v338_v47 = vadd.f32 %v337_v41, %v336_v37 }
  0x5f   : > { %v284_v17 = vmax.f32 %v282_v13, %v283_v15  ;;  %v376_v13 = vadd.f32 %v375_v11, %v374_v10 }
  0x60   : > { %v332_v50 = vrot.slane %v331_v44, 2  ;;  %v339_v52 = vrot.slane %v338_v47, 2 }
  0x61   : > { %v287_v18 = vcombine.low %v277_v14, %v284_v17 }
  0x62   : > { %v333_v53 = vadd.f32 %v332_v50, %v331_v44  ;;  %v340_v54 = vadd.f32 %v339_v52, %v338_v47 }
  0x63   : > { %v289_v20 = vsub.f32 %v265_v1, %v287_v18 }
  0x64   : > { %v334_v55 = vrot.slane %v333_v53, 1  ;;  %v341_v56 = vrot.slane %v340_v54, 1 }
  0x65   : > { %v290_v21 = vmul.f32 1.442695, %v289_v20 }
  0x66   : > { %v335_v59 = vadd.f32 %v334_v55, %v333_v53  ;;  %v342_v63 = vadd.f32 %v341_v56, %v340_v54 }
  0x67   : > { %595 = vpow2.f32 %v290_v21 }
  0x71   : > { %v596_v28 = vpop.eup %595 }
  0x72   : > { %v293_v29 = vcombine.high %v596_v28, %v596_v28  ;;  %v295_v30 = vsel %vm270_vm1, %v596_v28, 0.0 }
  0x73   : > { %v296_v32 = vrot.slane %v295_v30, 4 }
  0x74   : > { %v302_v34 = vsel %vm270_vm1, %v293_v29, 0.0 }
  0x75   : > { %v297_v35 = vadd.f32 %v296_v32, %v295_v30  ;;  %v303_v36 = vrot.slane %v302_v34, 4 }
  0x77   : > { %v298_v39 = vrot.slane %v297_v35, 2  ;;  %v304_v40 = vadd.f32 %v303_v36, %v302_v34 }
  0x79   : > { %v299_v42 = vadd.f32 %v298_v39, %v297_v35  ;;  %v305_v43 = vrot.slane %v304_v40, 2 }
  0x7b   : > { %v300_v45 = vrot.slane %v299_v42, 1  ;;  %v306_v46 = vadd.f32 %v305_v43, %v304_v40 }
  0x7d   : > { %v301_v48 = vadd.f32 %v300_v45, %v299_v42  ;;  %v307_v49 = vrot.slane %v306_v46, 1 }
  0x7f   : > { %v308_v51 = vadd.f32 %v307_v49, %v306_v46  ;;  %597 = vlog2.f32 %v301_v48 }
  0x81   : > { %599 = vlog2.f32 %v308_v51 }
  0x89   : > { %v598_v57 = vpop.eup %597 }
  0x8a   : > { %v310_v58 = vmul.f32 0.6931472, %v598_v57 }
  0x8b   : > { %v600_v60 = vpop.eup %599 }
  0x8c   : > { %v312_v61 = vmul.f32 0.6931472, %v600_v60  ;;  %v313_v62 = vadd.f32 %v310_v58, %v277_v14  ;;  %v360_v14 = vld [vmem:[%s895_s30] sm:$0xf] }
  0x8e   : > { %v314_v1 = vadd.f32 %v312_v61, %v284_v17  ;;  %v343_v2 = vsub.f32 %v313_v62, %v335_v59  ;;  %v371_v17 = vld [vmem:[%s257_s18] sm:$0xf] }
  0x90   : > { %v344_v3 = vsub.f32 %v314_v1, %v342_v63  ;;  %v361_v4 = vsel %vm325_vm2, %v343_v2, 0.0 }
  0x91   : > { %v363_v7 = vsel %vm270_vm1, %v361_v4, 0.0 }
  0x92   : > { %v362_v8 = vsel %vm326_vm3, %v344_v3, 0.0 }
  0x93   : > { %v364_v9 = vsel %vm270_vm1, %v362_v8, 0.0 }
  0x94   : > { %v365_v12 = vadd.f32 %v364_v9, %v363_v7 }
  0x96   : > { %366 = vadd.xlane.f32.xlu0 %v365_v12 }
  0x9a   : > { %377 = vadd.xlane.f32.xlu0 %v376_v13 }
 0x123   : > { %v367_v15 = vpop.xlane.xlu0 %366 }
 0x124   : > { %v368_v16 = vadd.f32 %v367_v15, %v360_v14 }
 0x126   : > { %370 = vst.msk [vmem:[%s895_s30] sm:$0xf] %vm262_vm0, %v368_v16 }
 0x127   : > { %v378_v18 = vpop.xlane.xlu0 %377 }
 0x128   : > { %v379_v19 = vadd.f32 %v378_v18, %v371_v17 }
 0x12a   : > { %380 = vst.msk [vmem:[%s257_s18] sm:$0xf] %vm262_vm0, %v379_v19 }
 0x12b PF: > { %s20_s17 = sadd.s32 1, %s715_s17   ;;  %s961_s12 = smov %s699_s13 }
 0x12c   : > { %p17_p9 = scmp.ge.s32.totalorder %s20_s17, 4   ;;  %s962_s13 = smov %s703_s14 }
 0x12d   : > { %s963_s14 = smov %s789_s24  ;;  %s964_s15 = smov %s711_s16 }
 0x12e   : > { %s965_s16 = smov %s967_s19  ;;  %19 = sbr.rel (!%p17_p9) target bundleno = 6 (0x6), region = 97 }
 0x135   :  { %414 = vsyncpa [#allocation3], 1 }
 0x136   :  { %416 = vsyncpa [#allocation3 + $0x1], 1 }
 0x137   :  { %417 = vsyncpa [#allocation5], 1 }
 0x138   :  { %419 = vsyncpa [#allocation5 + $0x1], 1 }

</bundles_post_ra>
